<compile_context>
chip_gen: v5e
topology: v5e:2x2
jax: 0.10.0
libtpu: 0.0.40
codegen_flags: <defaults>
</compile_context>

<pallas_src>
import functools

import jax
import jax.numpy as jnp
from jax.experimental import pallas as pl
from jax.experimental.pallas import tpu as pltpu

EPS = 1e-5  # PyTorch nn.LayerNorm default


def _prenorm_kernel(x_ref, g_ref, b_ref, w_ref, wb_ref, o_ref):
    # x_ref: (TM, D); g/b: (1, D); w: (D, TN); wb: (1, TN); o: (TM, TN)
    x = x_ref[...].astype(jnp.float32)

    # --- LayerNorm over the last axis (biased variance, as in PyTorch) ---
    mean = jnp.mean(x, axis=-1, keepdims=True)
    centered = x - mean
    var = jnp.mean(centered * centered, axis=-1, keepdims=True)
    inv = jax.lax.rsqrt(var + EPS)
    y = centered * inv
    y = y * g_ref[...].astype(jnp.float32) + b_ref[...].astype(jnp.float32)

    # --- fn: Linear(dim, dim_out) on the MXU ---
    # Feed the weight in its native dtype (bf16-native MXU); only the LayerNorm
    # output is cast down to match.  Accumulate in f32.
    out = jnp.dot(y.astype(w_ref.dtype), w_ref[...],
                  preferred_element_type=jnp.float32)
    out = out + wb_ref[...].astype(jnp.float32)
    o_ref[...] = out.astype(o_ref.dtype)


def _round_up(v, m):
    return (v + m - 1) // m * m


@functools.partial(jax.jit, static_argnames=("tm", "tn"))
def prenorm(x, gamma, beta, w, wb, *, tm=256, tn=512):
    """x: (B, N, D).  Returns fn(LayerNorm(x)) with fn = Linear(D, D_out)."""
    B, N, D = x.shape
    D_out = w.shape[1]
    rows = B * N

    # Row tile: large enough to feed the MXU and amortize per-grid-step
    # overhead; keep it a multiple of 32 (bf16/int8 sublane packing) and pad
    # the row count instead of asserting divisibility.
    tm = min(tm, _round_up(rows, 32))
    rows_p = _round_up(rows, tm)

    # Lane-dense output: pad fn's output dim to a multiple of 128 so output
    # stores are unmasked vst; tile it with tn (must divide the padded width).
    D_out_p = _round_up(D_out, 128)
    tn = _round_up(min(tn, D_out_p), 128)
    while D_out_p % tn:
        tn -= 128

    x2 = x.reshape(rows, D)
    if rows_p != rows:
        x2 = jnp.pad(x2, ((0, rows_p - rows), (0, 0)))
    g2 = gamma.reshape(1, D)
    b2 = beta.reshape(1, D)
    w2 = w if D_out_p == D_out else jnp.pad(w, ((0, 0), (0, D_out_p - D_out)))
    wb2 = (wb if D_out_p == D_out
           else jnp.pad(wb, ((0, D_out_p - D_out),))).reshape(1, D_out_p)

    grid = (rows_p // tm, D_out_p // tn)

    cost = pl.CostEstimate(
        flops=2 * rows_p * D * D_out_p,
        transcendentals=rows_p,  # one rsqrt per row
        bytes_accessed=(rows_p * D * x.dtype.itemsize
                        + D * D_out_p * w.dtype.itemsize
                        + rows_p * D_out_p * x.dtype.itemsize),
    )

    out2 = pl.pallas_call(
        _prenorm_kernel,
        out_shape=jax.ShapeDtypeStruct((rows_p, D_out_p), x.dtype),
        grid_spec=pltpu.PrefetchScalarGridSpec(
            num_scalar_prefetch=0,
            grid=grid,
            in_specs=[
                pl.BlockSpec((tm, D), lambda i, j: (i, 0)),   # x rows
                pl.BlockSpec((1, D), lambda i, j: (0, 0)),    # gamma
                pl.BlockSpec((1, D), lambda i, j: (0, 0)),    # beta
                # Weight is tiled over D_out -> only a (D, tn) slab is resident
                # per step (keeps v7x's 64 MiB VMEM comfortable).
                pl.BlockSpec((D, tn), lambda i, j: (0, j)),   # fn weight tile
                pl.BlockSpec((1, tn), lambda i, j: (0, j)),   # fn bias tile
            ],
            out_specs=pl.BlockSpec((tm, tn), lambda i, j: (i, j)),
        ),
        compiler_params=pltpu.CompilerParams(
            dimension_semantics=("parallel", "parallel"),
            vmem_limit_bytes=48 * 1024 * 1024,
        ),
        cost_estimate=cost,
    )(x2, g2, b2, w2, wb2)

    return out2[:rows, :D_out].reshape(B, N, D_out)


def _reference(x, gamma, beta, w, wb):
    xf = x.astype(jnp.float32)
    mean = jnp.mean(xf, axis=-1, keepdims=True)
    var = jnp.mean((xf - mean) ** 2, axis=-1, keepdims=True)
    y = (xf - mean) * jax.lax.rsqrt(var + EPS) * gamma.astype(jnp.float32)
    y = y + beta.astype(jnp.float32)
    return y @ w.astype(jnp.float32) + wb.astype(jnp.float32)


if __name__ == "__main__":
    B, N, D = 2, 8, 32  # batch=2, seq=8, hidden dim=32

    key = jax.random.PRNGKey(0)
    kx, kw, kb = jax.random.split(key, 3)

    x = jax.random.normal(kx, (B, N, D), dtype=jnp.float32)

    # LayerNorm params: PyTorch init -> gamma=1, beta=0
    gamma = jnp.ones((D,), dtype=jnp.float32)
    beta = jnp.zeros((D,), dtype=jnp.float32)

    # fn = Linear(D, D): deterministic synthetic weights
    w = jax.random.normal(kw, (D, D), dtype=jnp.float32) * 0.05
    wb = jax.random.normal(kb, (D,), dtype=jnp.float32) * 0.05

    # --- f32 path ---
    out = prenorm(x, gamma, beta, w, wb)
    out = jax.block_until_ready(out)
    ref = _reference(x, gamma, beta, w, wb)
    assert out.shape == (B, N, D)
    assert jnp.allclose(out, ref, atol=1e-4, rtol=1e-4)

    # --- bf16 path (exercises the native-dtype MXU matmul) ---
    xb = x.astype(jnp.bfloat16)
    wbf = w.astype(jnp.bfloat16)
    wbbf = wb.astype(jnp.bfloat16)
    gbf = gamma.astype(jnp.bfloat16)
    bbf = beta.astype(jnp.bfloat16)
    out_bf = prenorm(xb, gbf, bbf, wbf, wbbf)
    out_bf = jax.block_until_ready(out_bf)
    ref_bf = _reference(xb, gbf, bbf, wbf, wbbf)
    assert out_bf.shape == (B, N, D)
    assert jnp.allclose(out_bf.astype(jnp.float32), ref_bf,
                        atol=6e-2, rtol=6e-2)

    print("KERNEL_OK")
</pallas_src>

<mosaic_0001>
module attributes {stable_mosaic.version = 11 : i64} {
  func.func @_prenorm_kernel(%arg0: i32, %arg1: i32, %arg2: memref<32x32xf32, #tpu.memory_space<vmem>>, %arg3: memref<1x32xf32, #tpu.memory_space<vmem>>, %arg4: memref<1x32xf32, #tpu.memory_space<vmem>>, %arg5: memref<32x128xf32, #tpu.memory_space<vmem>>, %arg6: memref<1x128xf32, #tpu.memory_space<vmem>>, %arg7: memref<32x128xf32, #tpu.memory_space<vmem>>) attributes {dimension_semantics = [#tpu.dimension_semantics<parallel>, #tpu.dimension_semantics<parallel>], iteration_bounds = array<i64: 1, 1>, scalar_prefetch = 0 : i64, scratch_operands = 0 : i64, tpu.core_type = #tpu.core_type<tc>, window_params = [{transform_indices = @transform_0, window_bounds = array<i64: 32, 32>}, {pipeline_mode = #tpu.pipeline_mode<synchronous>, transform_indices = @transform_1, window_bounds = array<i64: 1, 32>}, {pipeline_mode = #tpu.pipeline_mode<synchronous>, transform_indices = @transform_2, window_bounds = array<i64: 1, 32>}, {transform_indices = @transform_3, window_bounds = array<i64: 32, 128>}, {transform_indices = @transform_4, window_bounds = array<i64: 1, 128>}, {transform_indices = @transform_5, window_bounds = array<i64: 32, 128>}]} {
    %c0 = arith.constant 0 : index
    %c0_0 = arith.constant 0 : index
    %0 = vector.load %arg2[%c0, %c0_0] : memref<32x32xf32, #tpu.memory_space<vmem>>, vector<32x32xf32>
    %cst = arith.constant dense<0.000000e+00> : vector<32xf32>
    %1 = vector.multi_reduction <add>, %0, %cst [1] : vector<32x32xf32> to vector<32xf32>
    %2 = vector.shape_cast %1 : vector<32xf32> to vector<32x1xf32>
    %cst_1 = arith.constant 3.200000e+01 : f32
    %3 = vector.broadcast %cst_1 : f32 to vector<32x1xf32>
    %4 = arith.divf %2, %3 : vector<32x1xf32>
    %5 = vector.broadcast %4 : vector<32x1xf32> to vector<32x32xf32>
    %6 = arith.subf %0, %5 : vector<32x32xf32>
    %7 = arith.mulf %6, %6 : vector<32x32xf32>
    %cst_2 = arith.constant dense<0.000000e+00> : vector<32xf32>
    %8 = vector.multi_reduction <add>, %7, %cst_2 [1] : vector<32x32xf32> to vector<32xf32>
    %9 = vector.shape_cast %8 : vector<32xf32> to vector<32x1xf32>
    %cst_3 = arith.constant 3.200000e+01 : f32
    %10 = vector.broadcast %cst_3 : f32 to vector<32x1xf32>
    %11 = arith.divf %9, %10 : vector<32x1xf32>
    %cst_4 = arith.constant 9.99999974E-6 : f32
    %12 = vector.broadcast %cst_4 : f32 to vector<32x1xf32>
    %13 = arith.addf %11, %12 : vector<32x1xf32>
    %14 = math.rsqrt %13 : vector<32x1xf32>
    %15 = vector.broadcast %14 : vector<32x1xf32> to vector<32x32xf32>
    %16 = arith.mulf %6, %15 : vector<32x32xf32>
    %c0_5 = arith.constant 0 : index
    %c0_6 = arith.constant 0 : index
    %17 = vector.load %arg3[%c0_5, %c0_6] : memref<1x32xf32, #tpu.memory_space<vmem>>, vector<1x32xf32>
    %18 = vector.broadcast %17 : vector<1x32xf32> to vector<32x32xf32>
    %19 = arith.mulf %16, %18 : vector<32x32xf32>
    %c0_7 = arith.constant 0 : index
    %c0_8 = arith.constant 0 : index
    %20 = vector.load %arg4[%c0_7, %c0_8] : memref<1x32xf32, #tpu.memory_space<vmem>>, vector<1x32xf32>
    %21 = vector.broadcast %20 : vector<1x32xf32> to vector<32x32xf32>
    %22 = arith.addf %19, %21 : vector<32x32xf32>
    %c0_9 = arith.constant 0 : index
    %c0_10 = arith.constant 0 : index
    %23 = vector.load %arg5[%c0_9, %c0_10] : memref<32x128xf32, #tpu.memory_space<vmem>>, vector<32x128xf32>
    %cst_11 = arith.constant dense<0.000000e+00> : vector<32x128xf32>
    %24 = tpu.matmul %22, %23, %cst_11 {dimension_numbers = #tpu.dot_dimension_numbers<[1], [0], [0], [1], [0, 0, 1, 1], [], []>} : vector<32x32xf32>, vector<32x128xf32>, vector<32x128xf32> -> vector<32x128xf32>
    %c0_12 = arith.constant 0 : index
    %c0_13 = arith.constant 0 : index
    %25 = vector.load %arg6[%c0_12, %c0_13] : memref<1x128xf32, #tpu.memory_space<vmem>>, vector<1x128xf32>
    %26 = vector.broadcast %25 : vector<1x128xf32> to vector<32x128xf32>
    %27 = arith.addf %24, %26 : vector<32x128xf32>
    %c0_14 = arith.constant 0 : index
    %c0_15 = arith.constant 0 : index
    %28 = vector.load %arg7[%c0_14, %c0_15] : memref<32x128xf32, #tpu.memory_space<vmem>>, vector<32x128xf32>
    tpu.vector_store %arg7[%c0_14, %c0_15], %27 {strides = array<i32>} : memref<32x128xf32, #tpu.memory_space<vmem>>, vector<32x128xf32>,
    return
  }
  func.func @transform_0(%arg0: i32, %arg1: i32) -> (i32, i32) {
    %c0_i32 = arith.constant 0 : i32
    %c0_i32_0 = arith.constant 0 : i32
    return %arg0, %c0_i32 : i32, i32
  }
  func.func @transform_1(%arg0: i32, %arg1: i32) -> (i32, i32) {
    %c0_i32 = arith.constant 0 : i32
    %c0_i32_0 = arith.constant 0 : i32
    %c0_i32_1 = arith.constant 0 : i32
    return %c0_i32, %c0_i32_0 : i32, i32
  }
  func.func @transform_2(%arg0: i32, %arg1: i32) -> (i32, i32) {
    %c0_i32 = arith.constant 0 : i32
    %c0_i32_0 = arith.constant 0 : i32
    %c0_i32_1 = arith.constant 0 : i32
    return %c0_i32, %c0_i32_0 : i32, i32
  }
  func.func @transform_3(%arg0: i32, %arg1: i32) -> (i32, i32) {
    %c0_i32 = arith.constant 0 : i32
    %c0_i32_0 = arith.constant 0 : i32
    return %c0_i32, %arg1 : i32, i32
  }
  func.func @transform_4(%arg0: i32, %arg1: i32) -> (i32, i32) {
    %c0_i32 = arith.constant 0 : i32
    %c0_i32_0 = arith.constant 0 : i32
    return %c0_i32, %arg1 : i32, i32
  }
  func.func @transform_5(%arg0: i32, %arg1: i32) -> (i32, i32) {
    %c0_i32 = arith.constant 0 : i32
    return %arg0, %arg1 : i32, i32
  }
}

</mosaic_0001>

<bundles_post_ra>
// kernel: prenorm.1
= control target key start
LH: loop header
LB: loop body
LE: loop exit
PB: predicated region body
PF: predicated region fallthrough
CT: control target
= control target key end

     0   :  { %vm24_vm0 = vcmask 261120   ;;  %v223_v8 = vmov 32.0   ;;  %s331_s0 = inlined_call_operand.vmem [shape: f32[32,32], index: 0, kind: input, shape index: {}]   ;;  %s332_s1 = inlined_call_operand.vmem [shape: f32[1,32], index: 1, kind: input, shape index: {}]   ;;  %s333_s2 = inlined_call_operand.vmem [shape: f32[1,32], index: 2, kind: input, shape index: {}]   ;;  %s334_s4 = inlined_call_operand.vmem [shape: f32[1,128], index: 4, kind: input, shape index: {}]   ;;  %s335_s3 = inlined_call_operand.vmem [shape: f32[32,128], index: 3, kind: input, shape index: {}]   ;;  %s336_s5 = inlined_call_operand.vmem [shape: f32[32,128], index: 5, kind: output, shape index: {}]  }
   0x1   :  { %v22_v0 = vld [vmem:[%s331_s0 + $0x10] sm:$0xff]  ;;  %v20_v1 = vld [vmem:[%s331_s0] sm:$0xff]  ;;  %v23_v4 = vld [vmem:[%s331_s0 + $0x18] sm:$0xff]  ;;  %213 = vrcp.f32 %v223_v8 }
   0x2   :  { %v31_v2 = vsel %vm24_vm0, %v22_v0, 0.0  ;;  %v25_v3 = vsel %vm24_vm0, %v20_v1, 0.0  ;;  %v21_v5 = vld [vmem:[%s331_s0 + $0x8] sm:$0xff]  ;;  %v34_v6 = vsel %vm24_vm0, %v23_v4, 0.0  ;;  %v139_v35 = vld [vmem:[%s335_s3 + $0x18] sm:$0xff]  ;;  %v138_v36 = vld [vmem:[%s335_s3 + $0x10] sm:$0xff] }
   0x3   :  { %32 = vadd.xlane.f32.xlu0 %v31_v2  ;;  %26 = vadd.xlane.f32.xlu1 %v25_v3  ;;  %v28_v7 = vsel %vm24_vm0, %v21_v5, 0.0  ;;  %v137_v37 = vld [vmem:[%s335_s3 + $0x8] sm:$0xff]  ;;  %v136_v38 = vld [vmem:[%s335_s3] sm:$0xff] }
   0x4   :  { %168 = vmatpush.msra.mxu0 %v139_v35  ;;  %198 = vmatpush.msra.mxu2 %v139_v35  ;;  %v210_v3 = vld [vmem:[%s332_s1] ss:$0 sm:$0xff] }
   0x5   :  { %197 = vmatpush.msra.mxu1 %v139_v35  ;;  %199 = vmatpush.msra.mxu3 %v139_v35  ;;  %v211_v8 = vld [vmem:[%s333_s2] ss:$0 sm:$0xff] }
   0x6   :  { %169 = vmatpush.msra.mxu0 %v138_v36  ;;  %201 = vmatpush.msra.mxu2 %v138_v36 }
   0x7   :  { %v214_v9 = vpop.eup %213  ;;  %200 = vmatpush.msra.mxu1 %v138_v36  ;;  %202 = vmatpush.msra.mxu3 %v138_v36 }
   0x8   :  { %v38_v10 = vmul.f32 32.0, %v214_v9  ;;  %vm42_vm1 = vweird.f32 %v214_v9  ;;  %170 = vmatpush.msra.mxu0 %v137_v37  ;;  %204 = vmatpush.msra.mxu2 %v137_v37 }
   0x9   :  { %203 = vmatpush.msra.mxu1 %v137_v37  ;;  %205 = vmatpush.msra.mxu3 %v137_v37 }
   0xa   :  { %v39_v11 = vsub.f32 1.0, %v38_v10  ;;  %171 = vmatpush.msra.mxu0 %v136_v38  ;;  %207 = vmatpush.msra.mxu2 %v136_v38 }
   0xb   :  { %35 = vadd.xlane.f32.xlu0 %v34_v6  ;;  %29 = vadd.xlane.f32.xlu1 %v28_v7 }
   0xc   :  { %v40_v12 = vmul.f32 %v214_v9, %v39_v11  ;;  %206 = vmatpush.msra.mxu1 %v136_v38  ;;  %208 = vmatpush.msra.mxu3 %v136_v38 }
   0xe   :  { %v41_v13 = vadd.f32 %v214_v9, %v40_v12 }
  0x10   :  { %v43_v14 = vsel %vm42_vm1, %v214_v9, %v41_v13 }
  0x76   :  { %v33_v15 = vpop.xlane.xlu0 %32  ;;  %v27_v16 = vpop.xlane.xlu1 %26 }
  0x77   :  { %v46_v17 = vmul.f32 %v43_v14, %v33_v15  ;;  %v44_v18 = vmul.f32 %v43_v14, %v27_v16 }
  0x79   :  { %v270_v19 = vsub.f32 %v22_v0, %v46_v17  ;;  %v272_v20 = vsub.f32 %v20_v1, %v44_v18 }
  0x7b   :  { %v54_v21 = vmul.f32 %v270_v19, %v270_v19  ;;  %v52_v22 = vmul.f32 %v272_v20, %v272_v20 }
  0x7d   :  { %v62_v23 = vsel %vm24_vm0, %v54_v21, 0.0  ;;  %v56_v24 = vsel %vm24_vm0, %v52_v22, 0.0 }
  0x7e   :  { %63 = vadd.xlane.f32.xlu2 %v62_v23  ;;  %v36_v25 = vpop.xlane.xlu0 %35  ;;  %57 = vadd.xlane.f32.xlu0 %v56_v24  ;;  %v30_v26 = vpop.xlane.xlu1 %29 }
  0x7f   :  { %v47_v27 = vmul.f32 %v43_v14, %v36_v25  ;;  %v45_v28 = vmul.f32 %v43_v14, %v30_v26 }
  0x81   :  { %v280_v29 = vsub.f32 %v23_v4, %v47_v27  ;;  %v282_v30 = vsub.f32 %v21_v5, %v45_v28 }
  0x83   :  { %v55_v31 = vmul.f32 %v280_v29, %v280_v29  ;;  %v53_v32 = vmul.f32 %v282_v30, %v282_v30 }
  0x85   :  { %v65_v33 = vsel %vm24_vm0, %v55_v31, 0.0  ;;  %v59_v34 = vsel %vm24_vm0, %v53_v32, 0.0  ;;  %v212_v31 = vld [vmem:[%s334_s4] ss:$0 sm:$0xff] }
  0x86   :  { %66 = vadd.xlane.f32.xlu2 %v65_v33  ;;  %60 = vadd.xlane.f32.xlu1 %v59_v34 }
  0xf1   :  { %v64_v39 = vpop.xlane.xlu2 %63  ;;  %v58_v40 = vpop.xlane.xlu0 %57 }
  0xf2   :  { %v70_v41 = vmul.f32 %v64_v39, %v43_v14  ;;  %v68_v42 = vmul.f32 %v58_v40, %v43_v14 }
  0xf4   :  { %v74_v43 = vadd.f32 1e-05, %v70_v41  ;;  %v72_v44 = vadd.f32 1e-05, %v68_v42 }
  0xf6   :  { %215 = vrsqrt.f32 %v74_v43  ;;  %vm82_vm3 = vweird.f32 %v72_v44  ;;  %vm102_vm5 = vweird.f32 %v74_v43 }
  0xf7   :  { %217 = vrsqrt.f32 %v72_v44 }
  0xf9   :  { %v67_v45 = vpop.xlane.xlu2 %66  ;;  %v61_v46 = vpop.xlane.xlu1 %60 }
  0xfa   :  { %v71_v47 = vmul.f32 %v67_v45, %v43_v14  ;;  %v69_v48 = vmul.f32 %v61_v46, %v43_v14 }
  0xfc   :  { %v216_v49 = vpop.eup %215  ;;  %v75_v50 = vadd.f32 1e-05, %v71_v47  ;;  %v73_v51 = vadd.f32 1e-05, %v69_v48 }
  0xfd   :  { %v218_v52 = vpop.eup %217  ;;  %v97_v53 = vmul.f32 %v216_v49, %v74_v43  ;;  %vm103_vm2 = vweird.f32 %v216_v49 }
  0xfe   :  { %v77_v54 = vmul.f32 %v218_v52, %v72_v44  ;;  %219 = vrsqrt.f32 %v75_v50  ;;  %vm83_vm4 = vweird.f32 %v218_v52  ;;  %vm104_vm6 = vmor %vm102_vm5, %vm103_vm2  ;;  %vm92_vm9 = vweird.f32 %v73_v51 }
  0xff   :  { %v98_v55 = vmul.f32 %v216_v49, %v97_v53  ;;  %221 = vrsqrt.f32 %v73_v51  ;;  %vm84_vm7 = vmor %vm82_vm3, %vm83_vm4  ;;  %vm112_vm11 = vweird.f32 %v75_v50 }
 0x100   :  { %v78_v56 = vmul.f32 %v218_v52, %v77_v54 }
 0x101   :  { %v99_v57 = vmul.f32 0.5, %v98_v55 }
 0x102   :  { %v79_v58 = vmul.f32 0.5, %v78_v56 }
 0x103   :  { %v100_v59 = vsub.f32 1.5, %v99_v57 }
 0x104   :  { %v220_v60 = vpop.eup %219  ;;  %v80_v61 = vsub.f32 1.5, %v79_v58 }
 0x105   :  { %v222_v62 = vpop.eup %221  ;;  %v101_v63 = vmul.f32 %v216_v49, %v100_v59  ;;  %v107_v0 = vmul.f32 %v220_v60, %v75_v50  ;;  %vm113_vm8 = vweird.f32 %v220_v60 }
 0x106   :  { %v81_v1 = vmul.f32 %v218_v52, %v80_v61  ;;  %v87_v2 = vmul.f32 %v222_v62, %v73_v51  ;;  %vm93_vm10 = vweird.f32 %v222_v62  ;;  %vm114_vm12 = vmor %vm112_vm11, %vm113_vm8 }
 0x107   :  { %v105_v4 = vsel %vm104_vm6, %v216_v49, %v101_v63  ;;  %v108_v5 = vmul.f32 %v220_v60, %v107_v0  ;;  %vm94_vm13 = vmor %vm92_vm9, %vm93_vm10 }
 0x108   :  { %v85_v6 = vsel %vm84_vm7, %v218_v52, %v81_v1  ;;  %v88_v7 = vmul.f32 %v222_v62, %v87_v2  ;;  %v118_v9 = vmul.f32 %v105_v4, %v270_v19 }
 0x109   :  { %v109_v10 = vmul.f32 0.5, %v108_v5  ;;  %v116_v11 = vmul.f32 %v85_v6, %v272_v20 }
 0x10a   :  { %v89_v12 = vmul.f32 0.5, %v88_v7  ;;  %v126_v13 = vmul.f32 %v210_v3, %v118_v9 }
 0x10b   :  { %v110_v14 = vsub.f32 1.5, %v109_v10  ;;  %v124_v15 = vmul.f32 %v210_v3, %v116_v11 }
 0x10c   :  { %v90_v16 = vsub.f32 1.5, %v89_v12  ;;  %v134_v17 = vadd.f32 %v211_v8, %v126_v13 }
 0x10d   :  { %v111_v18 = vmul.f32 %v220_v60, %v110_v14  ;;  %v132_v21 = vadd.f32 %v211_v8, %v124_v15 }
 0x10e   :  { %v91_v22 = vmul.f32 %v222_v62, %v90_v16  ;;  %195 = vmatmul.msk.f32.vlgmr.msra.gmra.mxu2 %vm24_vm0, %v134_v17 }
 0x10f   :  { %v115_v19 = vsel %vm114_vm12, %v220_v60, %v111_v18  ;;  %193 = vmatmul.msk.f32.vlgmr.msra.gmra.mxu0 %vm24_vm0, %v132_v21 }
 0x110   :  { %v95_v20 = vsel %vm94_vm13, %v222_v62, %v91_v22  ;;  %v119_v23 = vmul.f32 %v115_v19, %v280_v29 }
 0x111   :  { %v117_v24 = vmul.f32 %v95_v20, %v282_v30 }
 0x112   :  { %v127_v25 = vmul.f32 %v210_v3, %v119_v23 }
 0x113   :  { %v125_v26 = vmul.f32 %v210_v3, %v117_v24 }
 0x114   :  { %v135_v27 = vadd.f32 %v211_v8, %v127_v25 }
 0x115   :  { %v133_v28 = vadd.f32 %v211_v8, %v125_v26 }
 0x116   :  { %196 = vmatmul.msk.f32.vlgmr.msra.gmra.mxu3 %vm24_vm0, %v135_v27 }
 0x117   :  { %194 = vmatmul.msk.f32.vlgmr.msra.gmra.mxu1 %vm24_vm0, %v133_v28 }
 0x18c   :  { %v173_v32 = vpop.f32.mrf.mxu0 }
 0x18d   :  { %v174_v33 = vadd.f32 %v212_v31, %v173_v32 }
 0x18f   :  { %185 = vst [vmem:[%s336_s5] sm:$0xff] %v174_v33 }
 0x191   :  { %v179_v29 = vpop.f32.mrf.mxu2 }
 0x192   :  { %v180_v30 = vadd.f32 %v212_v31, %v179_v29 }
 0x194   :  { %187 = vst [vmem:[%s336_s5 + $0x10] sm:$0xff] %v180_v30  ;;  %v176_v34 = vpop.f32.mrf.mxu1 }
 0x195   :  { %v177_v35 = vadd.f32 %v212_v31, %v176_v34 }
 0x197   :  { %186 = vst [vmem:[%s336_s5 + $0x8] sm:$0xff] %v177_v35 }
 0x199   :  { %v182_v36 = vpop.f32.mrf.mxu3 }
 0x19a   :  { %v183_v37 = vadd.f32 %v212_v31, %v182_v36 }
 0x19c   :  { %188 = vst [vmem:[%s336_s5 + $0x18] sm:$0xff] %v183_v37 }

</bundles_post_ra>
